<compile_context>
chip_gen: v6e
topology: v6e:2x2x1
jax: 0.10.0
libtpu: 0.0.40
codegen_flags: <defaults>
</compile_context>

<pallas_src>
import functools

import jax
import jax.numpy as jnp
from jax.experimental import pallas as pl
from jax.experimental.pallas import tpu as pltpu


# --------------------------------------------------------------------------- #
# Small helpers                                                                #
# --------------------------------------------------------------------------- #
def _pad_axis(x, axis, mult):
    """Zero-pad `axis` of x up to the next multiple of `mult` (exact for this math)."""
    pad = (-x.shape[axis]) % mult
    if pad == 0:
        return x
    widths = [(0, 0)] * x.ndim
    widths[axis] = (0, pad)
    return jnp.pad(x, widths)


def _pick_tile(n, preferred, align):
    """Largest multiple of `align` that is <= preferred and divides n; fallback: n (full dim)."""
    t = (min(preferred, n) // align) * align
    while t >= align:
        if n % t == 0:
            return t
        t -= align
    return n


def _vmem_limit_bytes():
    """Generation-aware VMEM limit: ~75% of physical (96 MiB v5e/v6e, 48 MiB v7x)."""
    cap = 64 * 1024 * 1024  # conservative fallback = v7x per-core VMEM
    try:
        cap = int(getattr(pltpu.get_tpu_info(), "vmem_capacity_bytes", cap))
    except Exception:
        pass
    return (cap * 3) // 4


def _choose_tk(n, views, tm, dinp, doutp, premul, budget):
    """Contraction tile: prefer the full dim (no k axis / no scratch), else largest 128-divisor."""
    def working_set(tk):
        a = 2 * views * tm * tk * 2                                   # A tiles, double-buffered
        if premul:
            op = 2 * views * tk * doutp * 2                           # streamed Y tiles
            w_res = 0
        else:
            op = 2 * tk * dinp * 2                                    # streamed X tile
            w_res = 2 * views * dinp * doutp * 2                      # resident W
        out = 2 * tm * doutp * 4
        scratch = 0 if tk == n else views * tm * (doutp if premul else dinp) * 4
        return a + op + w_res + out + scratch

    if working_set(n) <= budget:
        return n
    t = (n // 128) * 128
    while t >= 128:
        if n % t == 0 and working_set(t) <= budget:
            return t
        t -= 128
    return 128 if n % 128 == 0 else n   # budget is advisory; fall back to smallest legal tile


# --------------------------------------------------------------------------- #
# Tiled per-layer kernels (scalable path)                                      #
# --------------------------------------------------------------------------- #
def _rgcn_layer_kernel(a_ref, x_ref, w_ref, b_ref, o_ref, *scratch,
                       views, apply_relu, inv_views, single_k):
    """out[r] = mean_v relu?( (A_norm_v[r,:] @ X) @ W_v + b_v ).

    single_k: grid=(R,), whole contraction in one block, no scratch.
    else    : grid=(R, K), (A_norm @ X) accumulated over k in a per-view f32 VMEM scratch.
    """
    if single_k:
        x = x_ref[...]                                                   # bf16 [N, Dinp]
        acc = None
        for v in range(views):
            agg = jnp.dot(a_ref[v], x, preferred_element_type=jnp.float32)
            out = jnp.dot(agg.astype(jnp.bfloat16), w_ref[v],
                          preferred_element_type=jnp.float32) + b_ref[v]
            if apply_relu:
                out = jnp.maximum(out, 0.0)                              # relu per view, pre-mean
            acc = out if acc is None else acc + out
        o_ref[...] = (acc * inv_views).astype(o_ref.dtype)               # 1/V applied once
    else:
        (agg_acc,) = scratch                                             # [V, tm, Dinp] f32
        k = pl.program_id(1)

        @pl.when(k == 0)
        def _():
            agg_acc[...] = jnp.zeros_like(agg_acc)

        x = x_ref[...]                                                   # bf16 [tk, Dinp]
        for v in range(views):
            agg_acc[v] += jnp.dot(a_ref[v], x, preferred_element_type=jnp.float32)

        @pl.when(k == pl.num_programs(1) - 1)
        def _():
            acc = None
            for v in range(views):
                out = jnp.dot(agg_acc[v].astype(jnp.bfloat16), w_ref[v],
                              preferred_element_type=jnp.float32) + b_ref[v]
                if apply_relu:
                    out = jnp.maximum(out, 0.0)
                acc = out if acc is None else acc + out
            o_ref[...] = (acc * inv_views).astype(o_ref.dtype)           # single output write


def _rgcn_layer_premul_kernel(a_ref, y_ref, b_ref, o_ref, *scratch,
                              views, apply_relu, inv_views, single_k):
    """Associativity path (Dout_pad < Din_pad): Y_v = X @ W_v precomputed in the wrapper,
    out[r] = mean_v relu?( A_norm_v[r,:] @ Y_v + b_v )."""
    if single_k:
        acc = None
        for v in range(views):
            out = jnp.dot(a_ref[v], y_ref[v], preferred_element_type=jnp.float32) + b_ref[v]
            if apply_relu:
                out = jnp.maximum(out, 0.0)
            acc = out if acc is None else acc + out
        o_ref[...] = (acc * inv_views).astype(o_ref.dtype)
    else:
        (agg_acc,) = scratch                                             # [V, tm, Doutp] f32
        k = pl.program_id(1)

        @pl.when(k == 0)
        def _():
            agg_acc[...] = jnp.zeros_like(agg_acc)

        for v in range(views):
            agg_acc[v] += jnp.dot(a_ref[v], y_ref[v], preferred_element_type=jnp.float32)

        @pl.when(k == pl.num_programs(1) - 1)
        def _():
            acc = None
            for v in range(views):
                out = agg_acc[v] + b_ref[v]
                if apply_relu:
                    out = jnp.maximum(out, 0.0)
                acc = out if acc is None else acc + out
            o_ref[...] = (acc * inv_views).astype(o_ref.dtype)


def rgcn_layer(a_norm, x, w, b, *, apply_relu, vmem_limit, tm=None, tk=None):
    """One relational layer.

    a_norm : [V, N, N]          bf16  (A + I) * 1/(deg+1)  (normalizer pre-folded)
    x      : [N, Din_p]         f32   node features, feature dim padded to a 128 multiple
    w      : [V, Din_p, Dout_p] bf16
    b      : [V, 1, Dout_p]     f32
    """
    V, N, _ = a_norm.shape
    dinp = x.shape[1]
    doutp = w.shape[2]
    premul = doutp < dinp        # A @ (X @ W) shrinks the N^2 aggregation's free dim

    if tm is None:
        tm = _pick_tile(N, 512, 16)          # 16-aligned rows: bf16 sublane packing
    if tk is None:
        tk = _choose_tk(N, V, tm, dinp, doutp, premul, budget=(vmem_limit * 3) // 5)
    single_k = (tk == N)
    grid = (N // tm,) if single_k else (N // tm, N // tk)
    semantics = ("parallel",) if single_k else ("parallel", "arbitrary")

    if premul:
        # Tiny per-layer prologue (O(N*Din*Dout), vs O(V*N^2*Dout) aggregation in the kernel).
        y = jnp.einsum("nd,vde->vne", x.astype(jnp.bfloat16), w,
                       preferred_element_type=jnp.float32).astype(jnp.bfloat16)
        if single_k:
            in_specs = [
                pl.BlockSpec((V, tm, N), lambda r: (0, r, 0)),
                pl.BlockSpec((V, N, doutp), lambda r: (0, 0, 0)),
                pl.BlockSpec((V, 1, doutp), lambda r: (0, 0, 0)),
            ]
        else:
            in_specs = [
                pl.BlockSpec((V, tm, tk), lambda r, k: (0, r, k)),
                pl.BlockSpec((V, tk, doutp), lambda r, k: (0, k, 0)),
                pl.BlockSpec((V, 1, doutp), lambda r, k: (0, 0, 0)),
            ]
        operands = (a_norm, y, b)
        kernel = functools.partial(_rgcn_layer_premul_kernel, views=V,
                                   apply_relu=apply_relu, inv_views=1.0 / V,
                                   single_k=single_k)
        scratch_feat = doutp
    else:
        x_b = x.astype(jnp.bfloat16)
        if single_k:
            in_specs = [
                pl.BlockSpec((V, tm, N), lambda r: (0, r, 0)),
                pl.BlockSpec((N, dinp), lambda r: (0, 0)),
                pl.BlockSpec((V, dinp, doutp), lambda r: (0, 0, 0)),
                pl.BlockSpec((V, 1, doutp), lambda r: (0, 0, 0)),
            ]
        else:
            in_specs = [
                pl.BlockSpec((V, tm, tk), lambda r, k: (0, r, k)),
                pl.BlockSpec((tk, dinp), lambda r, k: (k, 0)),
                pl.BlockSpec((V, dinp, doutp), lambda r, k: (0, 0, 0)),
                pl.BlockSpec((V, 1, doutp), lambda r, k: (0, 0, 0)),
            ]
        operands = (a_norm, x_b, w, b)
        kernel = functools.partial(_rgcn_layer_kernel, views=V,
                                   apply_relu=apply_relu, inv_views=1.0 / V,
                                   single_k=single_k)
        scratch_feat = dinp

    if single_k:
        out_spec = pl.BlockSpec((tm, doutp), lambda r: (r, 0))
        scratch_shapes = []
    else:
        out_spec = pl.BlockSpec((tm, doutp), lambda r, k: (r, 0))
        scratch_shapes = [pltpu.VMEM((V, tm, scratch_feat), jnp.float32)]

    return pl.pallas_call(
        kernel,
        out_shape=jax.ShapeDtypeStruct((N, doutp), jnp.float32),
        grid_spec=pltpu.PrefetchScalarGridSpec(
            num_scalar_prefetch=0,
            grid=grid,
            in_specs=in_specs,
            out_specs=out_spec,
            scratch_shapes=scratch_shapes,
        ),
        compiler_params=pltpu.CompilerParams(
            dimension_semantics=semantics,
            vmem_limit_bytes=vmem_limit,
        ),
    )(*operands)


# --------------------------------------------------------------------------- #
# Fused whole-forward kernel (tiny-graph path: one grid-less launch)           #
# --------------------------------------------------------------------------- #
def _rgcn_fused_kernel(a_ref, x_ref, w1_ref, b1_ref, w2_ref, b2_ref, o_ref, *, views):
    inv_v = 1.0 / views
    x_b = x_ref[...]                                              # bf16 [N, Din_p]

    acc1 = None
    for v in range(views):                                        # V is tiny & static -> unrolled
        agg = jnp.dot(a_ref[v], x_b, preferred_element_type=jnp.float32)
        h_v = jnp.dot(agg.astype(jnp.bfloat16), w1_ref[v],
                      preferred_element_type=jnp.float32) + b1_ref[v]
        h_v = jnp.maximum(h_v, 0.0)                               # relu per view, pre-mean
        acc1 = h_v if acc1 is None else acc1 + h_v
    h = (acc1 * inv_v).astype(jnp.bfloat16)
    # dropout: identity (eval mode)

    acc2 = None
    for v in range(views):
        agg = jnp.dot(a_ref[v], h, preferred_element_type=jnp.float32)
        o_v = jnp.dot(agg.astype(jnp.bfloat16), w2_ref[v],
                      preferred_element_type=jnp.float32) + b2_ref[v]
        acc2 = o_v if acc2 is None else acc2 + o_v
    o_ref[...] = acc2 * inv_v


def _rgcn_fused(a_norm, x_p, w1, b1, w2, b2, vmem_limit):
    # TODO(synk): grid-less call uses one TensorCore; on v7x mid-size graphs prefer the tiled path
    # (the fuse threshold in rgcn_forward is kept low for that reason).
    V, N, _ = a_norm.shape
    doutp = w2.shape[2]
    return pl.pallas_call(
        functools.partial(_rgcn_fused_kernel, views=V),
        out_shape=jax.ShapeDtypeStruct((N, doutp), jnp.float32),
        compiler_params=pltpu.CompilerParams(vmem_limit_bytes=vmem_limit),
    )(a_norm, x_p.astype(jnp.bfloat16), w1, b1, w2, b2)


# --------------------------------------------------------------------------- #
# Full forward                                                                 #
# --------------------------------------------------------------------------- #
def rgcn_forward(A, X, params, *, fuse=None, tm=None, tk=None):
    """RGCN forward: conv1 (relu) -> dropout(identity) -> conv2, each a mean over views."""
    A = A.astype(jnp.float32)
    V, N, _ = A.shape
    out_dim = params["W2"].shape[2]

    # Precomputed once and shared by BOTH layers: normalizer folded into the self-loop-augmented
    # adjacency. bf16 quantization of 1/(deg+1) (~2^-9 rel) matches the accepted bf16 X precision.
    deg = jnp.sum(A, axis=-1, keepdims=True)                             # [V, N, 1]
    a_norm = ((A + jnp.eye(N, dtype=jnp.float32)[None]) / (deg + 1.0)).astype(jnp.bfloat16)

    # Zero-pad all feature dims to 128 lanes (exact: padded columns stay exactly zero end-to-end).
    x_p = _pad_axis(X.astype(jnp.float32), 1, 128)                       # [N, Din_p]
    w1_p = _pad_axis(_pad_axis(params["W1"], 1, 128), 2, 128).astype(jnp.bfloat16)
    w2_p = _pad_axis(_pad_axis(params["W2"], 1, 128), 2, 128).astype(jnp.bfloat16)
    b1_p = _pad_axis(params["b1"], 1, 128)[:, None, :].astype(jnp.float32)   # [V, 1, H_p]
    b2_p = _pad_axis(params["b2"], 1, 128)[:, None, :].astype(jnp.float32)   # [V, 1, Dout_p]

    vmem_limit = _vmem_limit_bytes()

    if fuse is None:
        # Tiny graphs only: launch/grid-step overhead dominates -> one fused, grid-less call.
        fuse = (V * N * N * 2) <= (2 << 20)

    if fuse:
        out_p = _rgcn_fused(a_norm, x_p, w1_p, b1_p, w2_p, b2_p, vmem_limit)
    else:
        h = rgcn_layer(a_norm, x_p, w1_p, b1_p, apply_relu=True,
                       vmem_limit=vmem_limit, tm=tm, tk=tk)
        # dropout: identity in eval mode
        out_p = rgcn_layer(a_norm, h, w2_p, b2_p, apply_relu=False,
                           vmem_limit=vmem_limit, tm=tm, tk=tk)
    return out_p[:, :out_dim]


def _reference_forward(A, X, params):
    """Pure-JAX f32 reference for correctness checking."""
    def layer(A, X, W, b, relu):
        deg = jnp.sum(A, axis=-1, keepdims=True)                         # [V, N, 1]
        agg = (jnp.einsum("vnm,md->vnd", A, X) + X[None]) / (deg + 1.0)
        out = jnp.einsum("vnd,vde->vne", agg, W) + b[:, None, :]
        if relu:
            out = jnp.maximum(out, 0.0)
        return jnp.mean(out, axis=0)

    h = layer(A, X, params["W1"], params["b1"], True)
    return layer(A, h, params["W2"], params["b2"], False)


# --------------------------------------------------------------------------- #
# Test                                                                         #
# --------------------------------------------------------------------------- #
if __name__ == "__main__":
    def make_case(views, N, in_dim, hid_dim, out_dim):
        key = jax.random.PRNGKey(0)
        k_adj, k_x, k_w1, k_b1, k_w2, k_b2 = jax.random.split(key, 6)
        A = (jax.random.uniform(k_adj, (views, N, N)) < 0.3).astype(jnp.float32)
        X = jax.random.normal(k_x, (N, in_dim), dtype=jnp.float32)
        params = {
            "W1": 0.1 * jax.random.normal(k_w1, (views, in_dim, hid_dim), dtype=jnp.float32),
            "b1": 0.1 * jax.random.normal(k_b1, (views, hid_dim), dtype=jnp.float32),
            "W2": 0.1 * jax.random.normal(k_w2, (views, hid_dim, out_dim), dtype=jnp.float32),
            "b2": 0.1 * jax.random.normal(k_b2, (views, out_dim), dtype=jnp.float32),
        }
        return A, X, params

    # --- Case 1: tiny graph (module-scale shapes). Exercises fused path + tiled single-k path. ---
    views, N, in_dim, hid_dim, out_dim = 2, 16, 8, 16, 8
    A, X, params = make_case(views, N, in_dim, hid_dim, out_dim)
    ref = _reference_forward(A, X, params)

    out_fused = jax.block_until_ready(rgcn_forward(A, X, params))          # fused auto-selected
    assert out_fused.shape == (N, out_dim), out_fused.shape
    assert jnp.allclose(out_fused, ref, atol=3e-2, rtol=3e-2), "fused kernel/reference mismatch"

    out_tiled = jax.block_until_ready(rgcn_forward(A, X, params, fuse=False))
    assert out_tiled.shape == (N, out_dim), out_tiled.shape
    assert jnp.allclose(out_tiled, ref, atol=3e-2, rtol=3e-2), "tiled kernel/reference mismatch"

    # --- Case 2: wider features / more nodes. Exercises the associativity (premul) path for
    # layer 1 (Din_p=256 > Dout_p=128), the k-tiled accumulator path, and 2 parallel row tiles. ---
    views2, N2, in2, hid2, out2 = 2, 256, 256, 16, 8
    A2, X2, params2 = make_case(views2, N2, in2, hid2, out2)
    ref2 = _reference_forward(A2, X2, params2)

    out2_tiled = jax.block_until_ready(
        rgcn_forward(A2, X2, params2, fuse=False, tm=128, tk=128))
    assert out2_tiled.shape == (N2, out2), out2_tiled.shape
    assert jnp.allclose(out2_tiled, ref2, atol=3e-2, rtol=3e-2), "case-2 kernel/reference mismatch"

    print("KERNEL_OK")
</pallas_src>

<mosaic_0001>
module attributes {stable_mosaic.version = 11 : i64} {
  func.func @_rgcn_fused_kernel(%arg0: memref<2x16x16xbf16, #tpu.memory_space<vmem>>, %arg1: memref<16x128xbf16, #tpu.memory_space<vmem>>, %arg2: memref<2x128x128xbf16, #tpu.memory_space<vmem>>, %arg3: memref<2x1x128xf32, #tpu.memory_space<vmem>>, %arg4: memref<2x128x128xbf16, #tpu.memory_space<vmem>>, %arg5: memref<2x1x128xf32, #tpu.memory_space<vmem>>, %arg6: memref<16x128xf32, #tpu.memory_space<vmem>>) attributes {dimension_semantics = [], scalar_prefetch = 0 : i64, scratch_operands = 0 : i64, tpu.core_type = #tpu.core_type<tc>} {
    %c0 = arith.constant 0 : index
    %c0_0 = arith.constant 0 : index
    %0 = vector.load %arg1[%c0, %c0_0] : memref<16x128xbf16, #tpu.memory_space<vmem>>, vector<16x128xbf16>
    %c0_1 = arith.constant 0 : index
    %c0_2 = arith.constant 0 : index
    %c0_3 = arith.constant 0 : index
    %1 = vector.load %arg0[%c0_1, %c0_2, %c0_3] : memref<2x16x16xbf16, #tpu.memory_space<vmem>>, vector<1x16x16xbf16>
    %2 = vector.shape_cast %1 : vector<1x16x16xbf16> to vector<16x16xbf16>
    %cst = arith.constant dense<0.000000e+00> : vector<16x128xf32>
    %3 = tpu.matmul %2, %0, %cst {dimension_numbers = #tpu.dot_dimension_numbers<[1], [0], [0], [1], [0, 0, 1, 1], [], []>} : vector<16x16xbf16>, vector<16x128xbf16>, vector<16x128xf32> -> vector<16x128xf32>
    %4 = arith.truncf %3 : vector<16x128xf32> to vector<16x128xbf16>
    %c0_4 = arith.constant 0 : index
    %c0_5 = arith.constant 0 : index
    %c0_6 = arith.constant 0 : index
    %5 = vector.load %arg2[%c0_4, %c0_5, %c0_6] : memref<2x128x128xbf16, #tpu.memory_space<vmem>>, vector<1x128x128xbf16>
    %6 = vector.shape_cast %5 : vector<1x128x128xbf16> to vector<128x128xbf16>
    %cst_7 = arith.constant dense<0.000000e+00> : vector<16x128xf32>
    %7 = tpu.matmul %4, %6, %cst_7 {dimension_numbers = #tpu.dot_dimension_numbers<[1], [0], [0], [1], [0, 0, 1, 1], [], []>} : vector<16x128xbf16>, vector<128x128xbf16>, vector<16x128xf32> -> vector<16x128xf32>
    %c0_8 = arith.constant 0 : index
    %c0_9 = arith.constant 0 : index
    %c0_10 = arith.constant 0 : index
    %8 = vector.load %arg3[%c0_8, %c0_9, %c0_10] : memref<2x1x128xf32, #tpu.memory_space<vmem>>, vector<1x1x128xf32>
    %9 = vector.shape_cast %8 : vector<1x1x128xf32> to vector<1x128xf32>
    %10 = vector.broadcast %9 : vector<1x128xf32> to vector<16x128xf32>
    %11 = arith.addf %7, %10 : vector<16x128xf32>
    %cst_11 = arith.constant 0.000000e+00 : f32
    %12 = vector.broadcast %cst_11 : f32 to vector<16x128xf32>
    %13 = arith.maximumf %11, %12 : vector<16x128xf32>
    %c1 = arith.constant 1 : index
    %c0_12 = arith.constant 0 : index
    %c0_13 = arith.constant 0 : index
    %14 = vector.load %arg0[%c1, %c0_12, %c0_13] : memref<2x16x16xbf16, #tpu.memory_space<vmem>>, vector<1x16x16xbf16>
    %15 = vector.shape_cast %14 : vector<1x16x16xbf16> to vector<16x16xbf16>
    %cst_14 = arith.constant dense<0.000000e+00> : vector<16x128xf32>
    %16 = tpu.matmul %15, %0, %cst_14 {dimension_numbers = #tpu.dot_dimension_numbers<[1], [0], [0], [1], [0, 0, 1, 1], [], []>} : vector<16x16xbf16>, vector<16x128xbf16>, vector<16x128xf32> -> vector<16x128xf32>
    %17 = arith.truncf %16 : vector<16x128xf32> to vector<16x128xbf16>
    %c1_15 = arith.constant 1 : index
    %c0_16 = arith.constant 0 : index
    %c0_17 = arith.constant 0 : index
    %18 = vector.load %arg2[%c1_15, %c0_16, %c0_17] : memref<2x128x128xbf16, #tpu.memory_space<vmem>>, vector<1x128x128xbf16>
    %19 = vector.shape_cast %18 : vector<1x128x128xbf16> to vector<128x128xbf16>
    %cst_18 = arith.constant dense<0.000000e+00> : vector<16x128xf32>
    %20 = tpu.matmul %17, %19, %cst_18 {dimension_numbers = #tpu.dot_dimension_numbers<[1], [0], [0], [1], [0, 0, 1, 1], [], []>} : vector<16x128xbf16>, vector<128x128xbf16>, vector<16x128xf32> -> vector<16x128xf32>
    %c1_19 = arith.constant 1 : index
    %c0_20 = arith.constant 0 : index
    %c0_21 = arith.constant 0 : index
    %21 = vector.load %arg3[%c1_19, %c0_20, %c0_21] : memref<2x1x128xf32, #tpu.memory_space<vmem>>, vector<1x1x128xf32>
    %22 = vector.shape_cast %21 : vector<1x1x128xf32> to vector<1x128xf32>
    %23 = vector.broadcast %22 : vector<1x128xf32> to vector<16x128xf32>
    %24 = arith.addf %20, %23 : vector<16x128xf32>
    %cst_22 = arith.constant 0.000000e+00 : f32
    %25 = vector.broadcast %cst_22 : f32 to vector<16x128xf32>
    %26 = arith.maximumf %24, %25 : vector<16x128xf32>
    %27 = arith.addf %13, %26 : vector<16x128xf32>
    %cst_23 = arith.constant 5.000000e-01 : f32
    %28 = vector.broadcast %cst_23 : f32 to vector<16x128xf32>
    %29 = arith.mulf %27, %28 : vector<16x128xf32>
    %30 = arith.truncf %29 : vector<16x128xf32> to vector<16x128xbf16>
    %c0_24 = arith.constant 0 : index
    %c0_25 = arith.constant 0 : index
    %c0_26 = arith.constant 0 : index
    %31 = vector.load %arg0[%c0_24, %c0_25, %c0_26] : memref<2x16x16xbf16, #tpu.memory_space<vmem>>, vector<1x16x16xbf16>
    %32 = vector.shape_cast %31 : vector<1x16x16xbf16> to vector<16x16xbf16>
    %cst_27 = arith.constant dense<0.000000e+00> : vector<16x128xf32>
    %33 = tpu.matmul %32, %30, %cst_27 {dimension_numbers = #tpu.dot_dimension_numbers<[1], [0], [0], [1], [0, 0, 1, 1], [], []>} : vector<16x16xbf16>, vector<16x128xbf16>, vector<16x128xf32> -> vector<16x128xf32>
    %34 = arith.truncf %33 : vector<16x128xf32> to vector<16x128xbf16>
    %c0_28 = arith.constant 0 : index
    %c0_29 = arith.constant 0 : index
    %c0_30 = arith.constant 0 : index
    %35 = vector.load %arg4[%c0_28, %c0_29, %c0_30] : memref<2x128x128xbf16, #tpu.memory_space<vmem>>, vector<1x128x128xbf16>
    %36 = vector.shape_cast %35 : vector<1x128x128xbf16> to vector<128x128xbf16>
    %cst_31 = arith.constant dense<0.000000e+00> : vector<16x128xf32>
    %37 = tpu.matmul %34, %36, %cst_31 {dimension_numbers = #tpu.dot_dimension_numbers<[1], [0], [0], [1], [0, 0, 1, 1], [], []>} : vector<16x128xbf16>, vector<128x128xbf16>, vector<16x128xf32> -> vector<16x128xf32>
    %c0_32 = arith.constant 0 : index
    %c0_33 = arith.constant 0 : index
    %c0_34 = arith.constant 0 : index
    %38 = vector.load %arg5[%c0_32, %c0_33, %c0_34] : memref<2x1x128xf32, #tpu.memory_space<vmem>>, vector<1x1x128xf32>
    %39 = vector.shape_cast %38 : vector<1x1x128xf32> to vector<1x128xf32>
    %40 = vector.broadcast %39 : vector<1x128xf32> to vector<16x128xf32>
    %41 = arith.addf %37, %40 : vector<16x128xf32>
    %c1_35 = arith.constant 1 : index
    %c0_36 = arith.constant 0 : index
    %c0_37 = arith.constant 0 : index
    %42 = vector.load %arg0[%c1_35, %c0_36, %c0_37] : memref<2x16x16xbf16, #tpu.memory_space<vmem>>, vector<1x16x16xbf16>
    %43 = vector.shape_cast %42 : vector<1x16x16xbf16> to vector<16x16xbf16>
    %cst_38 = arith.constant dense<0.000000e+00> : vector<16x128xf32>
    %44 = tpu.matmul %43, %30, %cst_38 {dimension_numbers = #tpu.dot_dimension_numbers<[1], [0], [0], [1], [0, 0, 1, 1], [], []>} : vector<16x16xbf16>, vector<16x128xbf16>, vector<16x128xf32> -> vector<16x128xf32>
    %45 = arith.truncf %44 : vector<16x128xf32> to vector<16x128xbf16>
    %c1_39 = arith.constant 1 : index
    %c0_40 = arith.constant 0 : index
    %c0_41 = arith.constant 0 : index
    %46 = vector.load %arg4[%c1_39, %c0_40, %c0_41] : memref<2x128x128xbf16, #tpu.memory_space<vmem>>, vector<1x128x128xbf16>
    %47 = vector.shape_cast %46 : vector<1x128x128xbf16> to vector<128x128xbf16>
    %cst_42 = arith.constant dense<0.000000e+00> : vector<16x128xf32>
    %48 = tpu.matmul %45, %47, %cst_42 {dimension_numbers = #tpu.dot_dimension_numbers<[1], [0], [0], [1], [0, 0, 1, 1], [], []>} : vector<16x128xbf16>, vector<128x128xbf16>, vector<16x128xf32> -> vector<16x128xf32>
    %c1_43 = arith.constant 1 : index
    %c0_44 = arith.constant 0 : index
    %c0_45 = arith.constant 0 : index
    %49 = vector.load %arg5[%c1_43, %c0_44, %c0_45] : memref<2x1x128xf32, #tpu.memory_space<vmem>>, vector<1x1x128xf32>
    %50 = vector.shape_cast %49 : vector<1x1x128xf32> to vector<1x128xf32>
    %51 = vector.broadcast %50 : vector<1x128xf32> to vector<16x128xf32>
    %52 = arith.addf %48, %51 : vector<16x128xf32>
    %53 = arith.addf %41, %52 : vector<16x128xf32>
    %cst_46 = arith.constant 5.000000e-01 : f32
    %54 = vector.broadcast %cst_46 : f32 to vector<16x128xf32>
    %55 = arith.mulf %53, %54 : vector<16x128xf32>
    %c0_47 = arith.constant 0 : index
    %c0_48 = arith.constant 0 : index
    %56 = vector.load %arg6[%c0_47, %c0_48] : memref<16x128xf32, #tpu.memory_space<vmem>>, vector<16x128xf32>
    tpu.vector_store %arg6[%c0_47, %c0_48], %55 {strides = array<i32>} : memref<16x128xf32, #tpu.memory_space<vmem>>, vector<16x128xf32>,
    return
  }
}

</mosaic_0001>

<bundles_post_ra>
// kernel: tpu_custom_call.1
= control target key start
LH: loop header
LB: loop body
LE: loop exit
PB: predicated region body
PF: predicated region fallthrough
CT: control target
= control target key end

     0   :  { %11 = vsyncpa [#allocation3], 0  ;;  %s1260_s0 = inlined_call_operand.hbm [shape: bf16[2,16,16], index: 0, kind: input, shape index: {}]   ;;  %s1261_s1 = inlined_call_operand.hbm [shape: bf16[16,128], index: 1, kind: input, shape index: {}]   ;;  %s1262_s2 = inlined_call_operand.hbm [shape: bf16[2,128,128], index: 2, kind: input, shape index: {}]   ;;  %s1263_s3 = inlined_call_operand.vmem [shape: f32[2,1,128], index: 3, kind: input, shape index: {}]   ;;  %s1264_s4 = inlined_call_operand.hbm [shape: bf16[2,128,128], index: 4, kind: input, shape index: {}]   ;;  %s1265_s5 = inlined_call_operand.vmem [shape: f32[2,1,128], index: 5, kind: input, shape index: {}]   ;;  %s1266_s6 = inlined_call_operand.hbm [shape: f32[16,128], index: 6, kind: output, shape index: {}]  }
   0x1   :  { %12 = vsyncpa [#allocation6], 0 }
   0x2   :  { %13 = vsyncpa [#allocation9], 0 }
   0x3   :  { %14 = vsyncpa [#allocation4], 0  ;;  %s1111_s21 = smov [#allocation5]   ;;  %s1112_s23 = smov [#allocation2]  }
   0x4   :  { %s32_s22 = sshll.u32 %s1111_s21, 4  ;;  %s20_s24 = sshll.u32 %s1112_s23, 4  ;;  %s33_s22 = int_to_ptr.vmem [resolvable:$true] %s32_s22  ;;  %s21_s24 = int_to_ptr.vmem [resolvable:$true] %s20_s24 }
   0x5   :  { %s1011_s25 = scalar_lea.vmem %s33_s22, 128  ;;  %p1016_p1 = scmp.lt.s32.totalorder %s33_s22, %s33_s22 }
   0x6   :  { %p1012_p0 = scmp.ne.s32.totalorder %s33_s22, %s1011_s25  ;;  %p1017_p2 = scmp.lt.s32.totalorder %s1011_s25, %s1011_s25 }
   0x8   :  { %p1018_p3 = por %p1017_p2, %p1016_p1 }
   0xa   :  { %p1019_p4 = pnand %p1018_p3, %p1012_p0 }
   0xc   :  { %1022 = shalt.err (!%p1019_p4)
}
   0xd   :  { %s1113_s26 = smov 64   ;;  %s1114_s27 = smov 4  }
   0xe   :  { %38 = dma.hbm_to_vmem [thread:$0]  %s1261_s1, 128, %s33_s22, [#allocation6], %s1113_s26, %s1113_s26, %s1114_s27  }
   0xf   :  { %s1031_s30 = scalar_lea.vmem %s21_s24, 256  ;;  %p1036_p6 = scmp.lt.s32.totalorder %s21_s24, %s21_s24 }
  0x10   :  { %p1032_p5 = scmp.ne.s32.totalorder %s21_s24, %s1031_s30  ;;  %p1037_p7 = scmp.lt.s32.totalorder %s1031_s30, %s1031_s30 }
  0x12   :  { %p1038_p8 = por %p1037_p7, %p1036_p6 }
  0x14   :  { %p1039_p9 = pnand %p1038_p8, %p1032_p5 }
  0x16   :  { %1042 = shalt.err (!%p1039_p9)
}
  0x17   :  { %26 = dma.hbm_to_vmem [thread:$0]  %s1260_s0, 256, %s21_s24, [#allocation3], %s1113_s26, %s1113_s26, %s1114_s27  }
  0x18   :  { %s1115_s9 = smov [#allocation7]   ;;  %s1116_s11 = smov [#allocation8]  }
  0x19   :  { %s44_s10 = sshll.u32 %s1115_s9, 4  ;;  %s58_s12 = sshll.u32 %s1116_s11, 4  ;;  %s45_s10 = int_to_ptr.vmem [resolvable:$true] %s44_s10  ;;  %s59_s12 = int_to_ptr.vmem [resolvable:$true] %s58_s12 }
  0x1a   :  { %s1051_s1 = scalar_lea.vmem %s45_s10, 2048  ;;  %p1056_p11 = scmp.lt.s32.totalorder %s45_s10, %s45_s10 }
  0x1b   :  { %p1052_p10 = scmp.ne.s32.totalorder %s45_s10, %s1051_s1  ;;  %p1057_p12 = scmp.lt.s32.totalorder %s1051_s1, %s1051_s1 }
  0x1d   :  { %p1058_p13 = por %p1057_p12, %p1056_p11 }
  0x1f   :  { %p1059_p0 = pnand %p1058_p13, %p1052_p10 }
  0x21   :  { %1062 = shalt.err (!%p1059_p0)
}
  0x22   :  { %50 = dma.hbm_to_vmem [thread:$0]  %s1262_s2, 2048, %s45_s10, [#allocation6], %s1113_s26, %s1113_s26, %s1114_s27  }
  0x23   :  { %s1071_s0 = scalar_lea.vmem %s59_s12, 2048  ;;  %p1076_p2 = scmp.lt.s32.totalorder %s59_s12, %s59_s12 }
  0x24   :  { %p1072_p1 = scmp.ne.s32.totalorder %s59_s12, %s1071_s0  ;;  %p1077_p3 = scmp.lt.s32.totalorder %s1071_s0, %s1071_s0 }
  0x26   :  { %p1078_p4 = por %p1077_p3, %p1076_p2 }
  0x28   :  { %p1079_p5 = pnand %p1078_p4, %p1072_p1 }
  0x2a   :  { %1082 = shalt.err (!%p1079_p5)
}
  0x2b   :  { %64 = dma.hbm_to_vmem [thread:$0]  %s1264_s4, 2048, %s59_s12, [#allocation9], %s1113_s26, %s1113_s26, %s1114_s27  }
  0x2c   :  { %1103 = dma.done.wait [#allocation3], 256  }
  0x2d   :  { %1104 = vsyncadd [#allocation3], 4294967040 }
  0x2e   :  { %1105 = dma.done.wait [#allocation6], 2176  }
  0x2f   :  { %1106 = vsyncadd [#allocation6], 4294965120 }
  0x30   :  { %1107 = dma.done.wait [#allocation9], 2048  }
  0x31   :  { %1108 = vsyncadd [#allocation9], 4294965248  ;;  %v1117_v0 = vmov 0.0   ;;  %vm1118_vm0 = vmmov 0   ;;  %v968_v1 = vld [vmem:[#allocation5] sm:$0xff]   ;;  %v1187_v2 = vld [vmem:[#allocation2] sm:$0xff]  }
  0x32   :  { %853 = vmatprep.subr.bf16.mxu1 %v1117_v0  ;;  %879 = vmatprep.subr.bf16.mxu0 %v1117_v0  ;;  %vm95_vm1 = vcmask 130048   ;;  %v1189_v3 = vld [vmem:[#allocation2 + $0x8] sm:$0xff]   ;;  %v971_v4 = vld [vmem:[#allocation7 + $0x38] sm:$0xff]   ;;  %v975_v8 = vld [vmem:[#allocation7 + $0x28] sm:$0xff]   ;;  %s1119_s22 = smov [#allocation10]  }
  0x33   :  { %855 = vmatprep.mubr.msk.bf16.mxu1 %vm1118_vm0, %v1117_v0  ;;  %881 = vmatprep.mubr.msk.bf16.mxu0 %vm1118_vm0, %v1117_v0  ;;  %v972_v5 = vld [vmem:[#allocation7 + $0x78] sm:$0xff]   ;;  %v973_v6 = vld [vmem:[#allocation7 + $0x30] sm:$0xff]   ;;  %v976_v9 = vld [vmem:[#allocation7 + $0x68] sm:$0xff]   ;;  %s750_s23 = sshll.u32 %s1119_s22, 4  ;;  %s751_s23 = int_to_ptr.vmem [resolvable:$true] %s750_s23 }
  0x34   :  { %854 = vmatpush3.bf16.msra.mxu1 %v968_v1  ;;  %880 = vmatpush3.bf16.msra.mxu0 %v968_v1  ;;  %v974_v7 = vld [vmem:[#allocation7 + $0x70] sm:$0xff]   ;;  %v977_v10 = vld [vmem:[#allocation7 + $0x20] sm:$0xff]   ;;  %v979_v12 = vld [vmem:[#allocation7 + $0x18] sm:$0xff]   ;;  %p1088_p7 = scmp.lt.s32.totalorder %s751_s23, %s751_s23 }
  0x35   :  { %859 = vmatprep.subr.bf16.mxu1 %v1117_v0  ;;  %885 = vmatprep.subr.bf16.mxu0 %v1117_v0  ;;  %v978_v11 = vld [vmem:[#allocation7 + $0x60] sm:$0xff]   ;;  %v980_v13 = vld [vmem:[#allocation7 + $0x58] sm:$0xff]   ;;  %v981_v14 = vld [vmem:[#allocation7 + $0x10] sm:$0xff]  }
  0x36   :  { %v982_v15 = vld [vmem:[#allocation7 + $0x50] sm:$0xff]   ;;  %v983_v16 = vld [vmem:[#allocation7 + $0x8] sm:$0xff]   ;;  %v985_v18 = vld [vmem:[#allocation7] sm:$0xff]  }
  0x37   :  { %856 = vmatmul.mubr.msk.bf16.vlgmr.msra.gmra.mxu1 %vm95_vm1, %v1187_v2  ;;  %882 = vmatmul.mubr.msk.bf16.vlgmr.msra.gmra.mxu0 %vm95_vm1, %v1189_v3  ;;  %v984_v17 = vld [vmem:[#allocation7 + $0x48] sm:$0xff]   ;;  %v986_v19 = vld [vmem:[#allocation7 + $0x40] sm:$0xff]   ;;  %v987_v53 = vld [vmem:[#allocation8 + $0x38] sm:$0xff]  }
  0x38   :  { %860 = vmatpush3.bf16.msra.mxu1 %v971_v4  ;;  %886 = vmatpush3.bf16.msra.mxu0 %v972_v5  ;;  %v767_v30 = vld [vmem:[%s1263_s3] ss:$0 sm:$0xff]  ;;  %v779_v31 = vld [vmem:[%s1263_s3 + $0x1] ss:$0 sm:$0xff]  ;;  %v988_v54 = vld [vmem:[#allocation8 + $0x78] sm:$0xff]  }
  0x39   :  { %861 = vmatprep.subr.bf16.mxu1 %v1117_v0  ;;  %887 = vmatprep.subr.bf16.mxu0 %v1117_v0  ;;  %v989_v55 = vld [vmem:[#allocation8 + $0x30] sm:$0xff]   ;;  %v991_v57 = vld [vmem:[#allocation8 + $0x28] sm:$0xff]   ;;  %v993_v59 = vld [vmem:[#allocation8 + $0x20] sm:$0xff]  }
  0x3a   :  { %875 = vmatprep.mubr.msk.bf16.mxu1 %vm1118_vm0, %v1117_v0  ;;  %901 = vmatprep.mubr.msk.bf16.mxu0 %vm1118_vm0, %v1117_v0  ;;  %v990_v56 = vld [vmem:[#allocation8 + $0x70] sm:$0xff]   ;;  %v992_v58 = vld [vmem:[#allocation8 + $0x68] sm:$0xff]   ;;  %v994_v60 = vld [vmem:[#allocation8 + $0x60] sm:$0xff]  }
  0x3b   :  { %v995_v61 = vld [vmem:[#allocation8 + $0x18] sm:$0xff]   ;;  %v997_v63 = vld [vmem:[#allocation8 + $0x10] sm:$0xff]   ;;  %v1001_v4 = vld [vmem:[#allocation8] sm:$0xff]  }
  0x3c   :  { %862 = vmatpush3.bf16.msra.mxu1 %v973_v6  ;;  %888 = vmatpush3.bf16.msra.mxu0 %v974_v7  ;;  %v996_v62 = vld [vmem:[#allocation8 + $0x58] sm:$0xff]   ;;  %v998_v1 = vld [vmem:[#allocation8 + $0x50] sm:$0xff]   ;;  %v1002_v5 = vld [vmem:[#allocation8 + $0x40] sm:$0xff]  }
  0x3d   :  { %863 = vmatprep.subr.bf16.mxu1 %v1117_v0  ;;  %889 = vmatprep.subr.bf16.mxu0 %v1117_v0 }
  0x40   :  { %864 = vmatpush3.bf16.msra.mxu1 %v975_v8  ;;  %890 = vmatpush3.bf16.msra.mxu0 %v976_v9 }
  0x41   :  { %865 = vmatprep.subr.bf16.mxu1 %v1117_v0  ;;  %891 = vmatprep.subr.bf16.mxu0 %v1117_v0 }
  0x44   :  { %866 = vmatpush3.bf16.msra.mxu1 %v977_v10  ;;  %892 = vmatpush3.bf16.msra.mxu0 %v978_v11 }
  0x45   :  { %867 = vmatprep.subr.bf16.mxu1 %v1117_v0  ;;  %893 = vmatprep.subr.bf16.mxu0 %v1117_v0 }
  0x48   :  { %868 = vmatpush3.bf16.msra.mxu1 %v979_v12  ;;  %894 = vmatpush3.bf16.msra.mxu0 %v980_v13 }
  0x49   :  { %869 = vmatprep.subr.bf16.mxu1 %v1117_v0  ;;  %895 = vmatprep.subr.bf16.mxu0 %v1117_v0 }
  0x4c   :  { %870 = vmatpush3.bf16.msra.mxu1 %v981_v14  ;;  %896 = vmatpush3.bf16.msra.mxu0 %v982_v15 }
  0x4d   :  { %871 = vmatprep.subr.bf16.mxu1 %v1117_v0  ;;  %897 = vmatprep.subr.bf16.mxu0 %v1117_v0 }
  0x50   :  { %872 = vmatpush3.bf16.msra.mxu1 %v983_v16  ;;  %898 = vmatpush3.bf16.msra.mxu0 %v984_v17  ;;  %v800_v16 = vld [vmem:[%s1265_s5 + $0x1] ss:$0 sm:$0xff] }
  0x51   :  { %873 = vmatprep.subr.bf16.mxu1 %v1117_v0  ;;  %899 = vmatprep.subr.bf16.mxu0 %v1117_v0 }
  0x54   :  { %874 = vmatpush3.bf16.msra.mxu1 %v985_v18  ;;  %900 = vmatpush3.bf16.msra.mxu0 %v986_v19 }
  0x55   :  { %905 = vmatprep.subr.bf16.mxu1 %v1117_v0  ;;  %931 = vmatprep.subr.bf16.mxu0 %v1117_v0 }
  0xf7   :  { %v133_v20 = vpop.f32.mrf.mxu1  ;;  %v300_v21 = vpop.f32.mrf.mxu0 }
  0xf9   :  { %v857_v22 = vpop.f32.mrf.mxu1  ;;  %v883_v23 = vpop.f32.mrf.mxu0 }
  0xfb   :  { %v136_v24 = vpop.f32.mrf.mxu1  ;;  %v303_v25 = vpop.f32.mrf.mxu0 }
  0xfc   :  { %v140_v26 = vpack.c.bf16 %v136_v24, %v133_v20  ;;  %v307_v27 = vpack.c.bf16 %v303_v25, %v300_v21 }
  0xfd   :  { %v858_v28 = vpop.f32.mrf.mxu1  ;;  %v884_v29 = vpop.f32.mrf.mxu0 }
  0xfe   :  { %876 = vmatmul.mubr.bf16.vlgmr.msra.gmra.mxu1 %v140_v26  ;;  %902 = vmatmul.mubr.bf16.vlgmr.msra.gmra.mxu0 %v307_v27 }
  0xff   :  { %907 = vmatprep.mubr.msk.bf16.mxu1 %vm1118_vm0, %v1117_v0  ;;  %933 = vmatprep.mubr.msk.bf16.mxu0 %vm1118_vm0, %v1117_v0 }
 0x1be   :  { %v246_v32 = vpop.f32.mrf.mxu1  ;;  %v415_v33 = vpop.f32.mrf.mxu0 }
 0x1bf   :  { %v247_v34 = vadd.f32 %v767_v30, %v246_v32  ;;  %v416_v35 = vadd.f32 %v779_v31, %v415_v33 }
 0x1c0   :  { %v877_v36 = vpop.f32.mrf.mxu1  ;;  %v903_v37 = vpop.f32.mrf.mxu0 }
 0x1c1   :  { %v253_v38 = vmax.f32 %v247_v34, 0.0  ;;  %v422_v39 = vmax.f32 %v416_v35, 0.0 }
 0x1c2   :  { %v249_v40 = vpop.f32.mrf.mxu1  ;;  %v418_v41 = vpop.f32.mrf.mxu0 }
 0x1c3   :  { %v250_v42 = vadd.f32 %v767_v30, %v249_v40  ;;  %v419_v43 = vadd.f32 %v779_v31, %v418_v41  ;;  %v424_v46 = vadd.f32 %v422_v39, %v253_v38 }
 0x1c4   :  { %v878_v44 = vpop.f32.mrf.mxu1  ;;  %v904_v45 = vpop.f32.mrf.mxu0 }
 0x1c5   :  { %v254_v47 = vmax.f32 %v250_v42, 0.0  ;;  %v423_v48 = vmax.f32 %v419_v43, 0.0  ;;  %v426_v50 = vmul.f32 0.5, %v424_v46 }
 0x1c7   :  { %v425_v49 = vadd.f32 %v423_v48, %v254_v47 }
 0x1c9   :  { %v427_v51 = vmul.f32 0.5, %v425_v49 }
 0x1cb   :  { %v428_v52 = vpack.c.bf16 %v427_v51, %v426_v50 }
 0x1cd   :  { %906 = vmatpush3.bf16.msra.mxu1 %v428_v52  ;;  %932 = vmatpush3.bf16.msra.mxu0 %v428_v52 }
 0x1ce   :  { %911 = vmatprep.subr.bf16.mxu1 %v1117_v0  ;;  %937 = vmatprep.subr.bf16.mxu0 %v1117_v0 }
 0x1d0   :  { %908 = vmatmul.mubr.msk.bf16.vlgmr.msra.gmra.mxu1 %vm95_vm1, %v1187_v2  ;;  %934 = vmatmul.mubr.msk.bf16.vlgmr.msra.gmra.mxu0 %vm95_vm1, %v1189_v3  ;;  %v999_v2 = vld [vmem:[#allocation8 + $0x8] sm:$0xff]  }
 0x1d1   :  { %912 = vmatpush3.bf16.msra.mxu1 %v987_v53  ;;  %938 = vmatpush3.bf16.msra.mxu0 %v988_v54  ;;  %v1000_v3 = vld [vmem:[#allocation8 + $0x48] sm:$0xff]  }
 0x1d2   :  { %913 = vmatprep.subr.bf16.mxu1 %v1117_v0  ;;  %939 = vmatprep.subr.bf16.mxu0 %v1117_v0 }
 0x1d3   :  { %927 = vmatprep.mubr.msk.bf16.mxu1 %vm1118_vm0, %v1117_v0  ;;  %953 = vmatprep.mubr.msk.bf16.mxu0 %vm1118_vm0, %v1117_v0 }
 0x1d5   :  { %914 = vmatpush3.bf16.msra.mxu1 %v989_v55  ;;  %940 = vmatpush3.bf16.msra.mxu0 %v990_v56 }
 0x1d6   :  { %915 = vmatprep.subr.bf16.mxu1 %v1117_v0  ;;  %941 = vmatprep.subr.bf16.mxu0 %v1117_v0 }
 0x1d9   :  { %916 = vmatpush3.bf16.msra.mxu1 %v991_v57  ;;  %942 = vmatpush3.bf16.msra.mxu0 %v992_v58 }
 0x1da   :  { %917 = vmatprep.subr.bf16.mxu1 %v1117_v0  ;;  %943 = vmatprep.subr.bf16.mxu0 %v1117_v0 }
 0x1dd   :  { %918 = vmatpush3.bf16.msra.mxu1 %v993_v59  ;;  %944 = vmatpush3.bf16.msra.mxu0 %v994_v60 }
 0x1de   :  { %919 = vmatprep.subr.bf16.mxu1 %v1117_v0  ;;  %945 = vmatprep.subr.bf16.mxu0 %v1117_v0 }
 0x1e1   :  { %920 = vmatpush3.bf16.msra.mxu1 %v995_v61  ;;  %946 = vmatpush3.bf16.msra.mxu0 %v996_v62 }
 0x1e2   :  { %921 = vmatprep.subr.bf16.mxu1 %v1117_v0  ;;  %947 = vmatprep.subr.bf16.mxu0 %v1117_v0 }
 0x1e5   :  { %922 = vmatpush3.bf16.msra.mxu1 %v997_v63  ;;  %948 = vmatpush3.bf16.msra.mxu0 %v998_v1 }
 0x1e6   :  { %923 = vmatprep.subr.bf16.mxu1 %v1117_v0  ;;  %949 = vmatprep.subr.bf16.mxu0 %v1117_v0 }
 0x1e9   :  { %924 = vmatpush3.bf16.msra.mxu1 %v999_v2  ;;  %950 = vmatpush3.bf16.msra.mxu0 %v1000_v3 }
 0x1ea   :  { %925 = vmatprep.subr.bf16.mxu1 %v1117_v0  ;;  %951 = vmatprep.subr.bf16.mxu0 %v1117_v0  ;;  %v789_v0 = vld [vmem:[%s1265_s5] ss:$0 sm:$0xff]  ;;  %s1083_s5 = scalar_lea.vmem %s751_s23, 256 }
 0x1eb   :  { %p1084_p6 = scmp.ne.s32.totalorder %s751_s23, %s1083_s5  ;;  %p1089_p8 = scmp.lt.s32.totalorder %s1083_s5, %s1083_s5 }
 0x1ed   :  { %926 = vmatpush3.bf16.msra.mxu1 %v1001_v4  ;;  %952 = vmatpush3.bf16.msra.mxu0 %v1002_v5  ;;  %p1090_p9 = por %p1089_p8, %p1088_p7 }
 0x1ef   :  { %p1091_p10 = pnand %p1090_p9, %p1084_p6 }
 0x290   :  { %v463_v6 = vpop.f32.mrf.mxu1  ;;  %v617_v7 = vpop.f32.mrf.mxu0 }
 0x292   :  { %v909_v8 = vpop.f32.mrf.mxu1  ;;  %v935_v9 = vpop.f32.mrf.mxu0 }
 0x294   :  { %v466_v10 = vpop.f32.mrf.mxu1  ;;  %v620_v11 = vpop.f32.mrf.mxu0 }
 0x295   :  { %v470_v12 = vpack.c.bf16 %v466_v10, %v463_v6  ;;  %v624_v13 = vpack.c.bf16 %v620_v11, %v617_v7 }
 0x296   :  { %v910_v14 = vpop.f32.mrf.mxu1  ;;  %v936_v15 = vpop.f32.mrf.mxu0 }
 0x297   :  { %928 = vmatmul.mubr.bf16.vlgmr.msra.gmra.mxu1 %v470_v12  ;;  %954 = vmatmul.mubr.bf16.vlgmr.msra.gmra.mxu0 %v624_v13 }
 0x357   :  { %v576_v17 = vpop.f32.mrf.mxu1  ;;  %v732_v18 = vpop.f32.mrf.mxu0 }
 0x358   :  { %v577_v19 = vadd.f32 %v789_v0, %v576_v17  ;;  %v733_v20 = vadd.f32 %v800_v16, %v732_v18 }
 0x359   :  { %v929_v21 = vpop.f32.mrf.mxu1  ;;  %v955_v22 = vpop.f32.mrf.mxu0 }
 0x35a   :  { %v739_v23 = vadd.f32 %v733_v20, %v577_v19 }
 0x35b   :  { %v579_v24 = vpop.f32.mrf.mxu1  ;;  %v735_v25 = vpop.f32.mrf.mxu0 }
 0x35c   :  { %v741_v26 = vmul.f32 0.5, %v739_v23  ;;  %v580_v27 = vadd.f32 %v789_v0, %v579_v24  ;;  %v736_v28 = vadd.f32 %v800_v16, %v735_v25 }
 0x35d   :  { %v930_v29 = vpop.f32.mrf.mxu1  ;;  %v956_v30 = vpop.f32.mrf.mxu0 }
 0x35e   :  { %743 = vst [vmem:[#allocation10] sm:$0xff] %v741_v26  ;;  %v740_v31 = vadd.f32 %v736_v28, %v580_v27 }
 0x360   :  { %v742_v32 = vmul.f32 0.5, %v740_v31 }
 0x362   :  { %744 = vst [vmem:[#allocation10 + $0x8] sm:$0xff] %v742_v32 }
 0x363   :  { %1094 = shalt.err (!%p1091_p10)
}
 0x364   :  { %s1120_s24 = smov 128   ;;  %s1121_s25 = smov 8  }
 0x365   :  { %756 = dma.vmem_to_hbm [thread:$0]  %s751_s23, 256, %s1266_s6, [#allocation4], %s1120_s24, %s1120_s24, %s1121_s25  }
 0x366   :  { %1109 = dma.done.wait [#allocation4], 256  }
 0x367   :  { %1110 = vsyncadd [#allocation4], 4294967040 }
 0x368   :  { %760 = vsyncpa [#allocation3], 1 }
 0x369   :  { %761 = vsyncpa [#allocation6], 1 }
 0x36a   :  { %762 = vsyncpa [#allocation9], 1 }
 0x36b   :  { %763 = vsyncpa [#allocation4], 1 }

</bundles_post_ra>
